<compile_context>
chip_gen: v6e
topology: v6e:2x2x1
jax: 0.10.0
libtpu: 0.0.40
codegen_flags: <defaults>
</compile_context>

<pallas_src>
import jax
import jax.numpy as jnp
from jax.experimental import pallas as pl
from jax.experimental.pallas import tpu as pltpu

_LANE = 128                    # vreg lane width: last dim multiple of this
_TILE_BYTES = 2 << 20          # ~2 MiB per tile (in+out x 2 bufs = 8 MiB VMEM)
_XLA_FALLBACK_ELEMS = 1 << 19  # below this, let XLA fuse the scalar affine

# Packed sublane multiple per element size (f32 -> 8, bf16 -> 16, int8 -> 32).
_SUBLANE_BY_ITEMSIZE = {4: 8, 2: 16, 1: 32}


def _round_up(n, m):
    return ((n + m - 1) // m) * m


def _scale_bias_kernel(w_ref, b_ref, x_ref, o_ref):
    # w_ref, b_ref: (1, 1) f32 scalars in SMEM; x_ref/o_ref: (tile_rows, 128)
    # VMEM tiles. Pure streaming elementwise: o = w * x + b.
    w = w_ref[0, 0]
    b = b_ref[0, 0]
    o_ref[...] = (x_ref[...] * w + b).astype(o_ref.dtype)


def toy_model_forward(x, weight, bias, *, force_pallas=False, donate_input=False):
    """x: (N, 1, H, W) NCHW. weight: (1,1,1,1). bias: (1,)."""
    N, C, H, W = x.shape
    assert C == 1, "ToyModel's conv expects a single input channel"
    dtype = x.dtype
    itemsize = jnp.dtype(dtype).itemsize
    sub = _SUBLANE_BY_ITEMSIZE.get(itemsize, 8)

    total = N * C * H * W
    if not force_pallas and total < _XLA_FALLBACK_ELEMS:
        # Tiny stream: per-call fixed costs dwarf the work; let XLA fuse the
        # scalar affine instead of launching a Pallas custom call.
        return (x * weight.reshape(()) + bias.reshape(())).astype(dtype)

    w_s = weight.reshape(1, 1).astype(jnp.float32)
    b_s = bias.reshape(1, 1).astype(jnp.float32)

    # Lane-dense 2-D slab: last dim = 128 lanes. Pad only to a lane multiple
    # (usually a no-op); the ragged last row-tile is masked by Pallas, so we
    # never pad to a tile multiple (that was an extra full HBM pass).
    rows = pl.cdiv(total, _LANE)
    padded_total = rows * _LANE
    flat = x.reshape(total)
    if padded_total != total:
        flat = jnp.pad(flat, (0, padded_total - total))
    x2d = flat.reshape(rows, _LANE)

    if rows <= sub:
        # Full-extent block (legal even when rows < sublane multiple).
        tile_rows = rows
    else:
        # Target >= 4 tiles (v7x megacore sharding + pipelining), cap tile
        # bytes at ~2 MiB regardless of dtype width.
        max_tile_rows = max(_TILE_BYTES // (_LANE * itemsize), sub)
        tile_rows = min(max_tile_rows, _round_up(pl.cdiv(rows, 4), sub))

    grid = (pl.cdiv(rows, tile_rows),)

    out2d = pl.pallas_call(
        _scale_bias_kernel,
        out_shape=jax.ShapeDtypeStruct(x2d.shape, dtype),
        grid=grid,
        in_specs=[
            pl.BlockSpec(memory_space=pltpu.MemorySpace.SMEM),   # weight scalar
            pl.BlockSpec(memory_space=pltpu.MemorySpace.SMEM),   # bias scalar
            pl.BlockSpec((tile_rows, _LANE), lambda i: (i, 0)),  # x row-tile
        ],
        out_specs=pl.BlockSpec((tile_rows, _LANE), lambda i: (i, 0)),
        compiler_params=pltpu.CompilerParams(
            dimension_semantics=("parallel",),  # independent tiles -> megacore
        ),
        # Optional: reuse x2d's HBM buffer for the output when donatable.
        input_output_aliases={2: 0} if donate_input else {},
    )(w_s, b_s, x2d)

    out_flat = out2d.reshape(padded_total)
    if padded_total != total:
        out_flat = out_flat[:total]  # crop lane padding before NCHW reshape
    return out_flat.reshape(N, C, H, W)


if __name__ == "__main__":
    key = jax.random.PRNGKey(0)
    k_x, k_w, k_b, k_x2, k_x3 = jax.random.split(key, 5)

    # Small NCHW input consistent with Conv2d(1, 1, 1): batch=2, C=1, 16x16.
    x = jax.random.normal(k_x, (2, 1, 16, 16), dtype=jnp.float32)

    # Deterministic parameter init for toy_conv (weight [1,1,1,1], bias [1]).
    toy_conv_weight = jax.random.normal(k_w, (1, 1, 1, 1), dtype=jnp.float32)
    toy_conv_bias = jax.random.normal(k_b, (1,), dtype=jnp.float32)
    # TODO(synk): no_record_conv exists in __init__ but is unused in forward();
    # its parameters do not influence the output, so they are not materialized.

    w0 = toy_conv_weight[0, 0, 0, 0]
    b0 = toy_conv_bias[0]

    # 1) Tiny test input — force the Pallas path (single full-extent tile).
    y = toy_model_forward(x, toy_conv_weight, toy_conv_bias, force_pallas=True)
    y = jax.block_until_ready(y)
    assert y.shape == (2, 1, 16, 16)
    assert jnp.allclose(y, x * w0 + b0, atol=1e-6, rtol=1e-6)

    # 2) Lane-aligned larger input — multi-tile pipelined grid, zero pad/crop.
    x_big = jax.random.normal(k_x2, (2, 1, 256, 256), dtype=jnp.float32)
    y_big = jax.block_until_ready(
        toy_model_forward(x_big, toy_conv_weight, toy_conv_bias,
                          force_pallas=True))
    assert jnp.allclose(y_big, x_big * w0 + b0, atol=1e-6, rtol=1e-6)

    # 3) Non-aligned input — exercises lane padding + ragged (masked) last tile.
    x_odd = jax.random.normal(k_x3, (1, 1, 100, 100), dtype=jnp.float32)
    y_odd = jax.block_until_ready(
        toy_model_forward(x_odd, toy_conv_weight, toy_conv_bias,
                          force_pallas=True))
    assert jnp.allclose(y_odd, x_odd * w0 + b0, atol=1e-6, rtol=1e-6)

    print("KERNEL_OK")
</pallas_src>

<mosaic_0001>
module attributes {stable_mosaic.version = 11 : i64} {
  func.func @_scale_bias_kernel(%arg0: i32, %arg1: memref<1x1xf32, #tpu.memory_space<smem>>, %arg2: memref<1x1xf32, #tpu.memory_space<smem>>, %arg3: memref<4x128xf32, #tpu.memory_space<vmem>>, %arg4: memref<4x128xf32, #tpu.memory_space<vmem>>) attributes {dimension_semantics = [#tpu.dimension_semantics<parallel>], iteration_bounds = array<i64: 1>, scalar_prefetch = 0 : i64, scratch_operands = 0 : i64, tpu.core_type = #tpu.core_type<tc>, window_params = [{transform_indices = @transform_0, window_bounds = array<i64: 1, 1>}, {transform_indices = @transform_1, window_bounds = array<i64: 1, 1>}, {transform_indices = @transform_2, window_bounds = array<i64: 4, 128>}, {transform_indices = @transform_3, window_bounds = array<i64: 4, 128>}]} {
    %c0 = arith.constant 0 : index
    %c0_0 = arith.constant 0 : index
    %0 = memref.load %arg1[%c0, %c0_0] : memref<1x1xf32, #tpu.memory_space<smem>>
    %c0_1 = arith.constant 0 : index
    %c0_2 = arith.constant 0 : index
    %1 = memref.load %arg2[%c0_1, %c0_2] : memref<1x1xf32, #tpu.memory_space<smem>>
    %c0_3 = arith.constant 0 : index
    %c0_4 = arith.constant 0 : index
    %2 = vector.load %arg3[%c0_3, %c0_4] : memref<4x128xf32, #tpu.memory_space<vmem>>, vector<4x128xf32>
    %3 = vector.broadcast %0 : f32 to vector<4x128xf32>
    %4 = arith.mulf %2, %3 : vector<4x128xf32>
    %5 = vector.broadcast %1 : f32 to vector<4x128xf32>
    %6 = arith.addf %4, %5 : vector<4x128xf32>
    %c0_5 = arith.constant 0 : index
    %c0_6 = arith.constant 0 : index
    %7 = vector.load %arg4[%c0_5, %c0_6] : memref<4x128xf32, #tpu.memory_space<vmem>>, vector<4x128xf32>
    tpu.vector_store %arg4[%c0_5, %c0_6], %6 {strides = array<i32>} : memref<4x128xf32, #tpu.memory_space<vmem>>, vector<4x128xf32>,
    return
  }
  func.func @transform_0(%arg0: i32) -> (i32, i32) {
    %c0_i32 = arith.constant 0 : i32
    %c0_i32_0 = arith.constant 0 : i32
    %c0_i32_1 = arith.constant 0 : i32
    return %c0_i32, %c0_i32_0 : i32, i32
  }
  func.func @transform_1(%arg0: i32) -> (i32, i32) {
    %c0_i32 = arith.constant 0 : i32
    %c0_i32_0 = arith.constant 0 : i32
    %c0_i32_1 = arith.constant 0 : i32
    return %c0_i32, %c0_i32_0 : i32, i32
  }
  func.func @transform_2(%arg0: i32) -> (i32, i32) {
    %c0_i32 = arith.constant 0 : i32
    %c0_i32_0 = arith.constant 0 : i32
    return %arg0, %c0_i32 : i32, i32
  }
  func.func @transform_3(%arg0: i32) -> (i32, i32) {
    %c0_i32 = arith.constant 0 : i32
    %c0_i32_0 = arith.constant 0 : i32
    return %arg0, %c0_i32 : i32, i32
  }
}

</mosaic_0001>

<bundles_post_ra>
// kernel: tpu_custom_call.1
= control target key start
LH: loop header
LB: loop body
LE: loop exit
PB: predicated region body
PF: predicated region fallthrough
CT: control target
= control target key end

     0   :  { %s95_s0 = inlined_call_operand.<no memory space> [shape: f32[1,1], index: 0, kind: input, shape index: {}]   ;;  %s96_s1 = inlined_call_operand.<no memory space> [shape: f32[1,1], index: 1, kind: input, shape index: {}]   ;;  %s97_s2 = inlined_call_operand.vmem [shape: f32[4,128], index: 2, kind: input, shape index: {}]   ;;  %s98_s3 = inlined_call_operand.hbm [shape: f32[4,128], index: 3, kind: output, shape index: {}]  }
   0x1   :  { %v19_v0 = vld [vmem:[%s97_s2] sm:$0xf]  ;;  %v20_v1 = vstv %s95_s0  ;;  %v22_v2 = vstv %s96_s1 }
   0x2   :  { %10 = vsyncpa [#allocation5], 0  ;;  %v21_v3 = vmul.f32 %v20_v1, %v19_v0  ;;  %s62_s18 = smov [#allocation4]  }
   0x3   :  { %s31_s19 = sshll.u32 %s62_s18, 4  ;;  %s32_s19 = int_to_ptr.vmem [resolvable:$true] %s31_s19 }
   0x4   :  { %v23_v4 = vadd.f32 %v22_v2, %v21_v3  ;;  %s40_s20 = scalar_lea.vmem %s32_s19, 64  ;;  %p45_p1 = scmp.lt.s32.totalorder %s32_s19, %s32_s19 }
   0x5   :  { %p41_p0 = scmp.ne.s32.totalorder %s32_s19, %s40_s20  ;;  %p46_p2 = scmp.lt.s32.totalorder %s40_s20, %s40_s20 }
   0x6   :  { %24 = vst [vmem:[#allocation4] sm:$0xf] %v23_v4 }
   0x7   :  { %p47_p3 = por %p46_p2, %p45_p1 }
   0x9   :  { %p48_p4 = pnand %p47_p3, %p41_p0 }
   0xb   :  { %51 = shalt.err (!%p48_p4)
}
   0xc   :  { %34 = dma.vmem_to_hbm [thread:$0]  %s32_s19, 64, %s98_s3, [#allocation5]  }
   0xd   :  { %60 = dma.done.wait [#allocation5], 64  }
   0xe   :  { %61 = vsyncadd [#allocation5], 4294967232 }
   0xf   :  { %38 = vsyncpa [#allocation5], 1 }

</bundles_post_ra>
